<compile_context>
chip_gen: v6e
topology: v6e:2x2x1
jax: 0.10.0
libtpu: 0.0.40
codegen_flags: <defaults>
</compile_context>

<pallas_src>
import functools
import math

import jax
import jax.numpy as jnp
from jax.experimental import pallas as pl
from jax.experimental.pallas import tpu as pltpu


def _round_up(x, m):
    return (x + m - 1) // m * m


def _pick_tile(n, cap, quantum):
    """Largest multiple of `quantum` <= cap that divides n (n % quantum == 0)."""
    t = max(quantum, min(n, cap) // quantum * quantum)
    while n % t:
        t -= quantum
    return t


# ----------------------------- Pallas kernels ------------------------------

def _mm_act_kernel(a_ref, b_ref, o_ref, acc_ref, *, act):
    """K-tiled bf16 matmul with f32 accumulator; activation fused at k==last."""
    k = pl.program_id(1)
    nk = pl.num_programs(1)

    @pl.when(k == 0)
    def _():
        acc_ref[...] = jnp.zeros_like(acc_ref)

    acc_ref[...] += jnp.dot(a_ref[...], b_ref[...],
                            preferred_element_type=jnp.float32)

    @pl.when(k == nk - 1)
    def _():
        acc = acc_ref[...]
        if act == "lrelu":
            y = jnp.where(acc > 0, acc, 0.2 * acc)
        elif act == "sigmoid":
            y = jax.nn.sigmoid(acc)
        else:
            y = acc
        o_ref[...] = y.astype(o_ref.dtype)


def _mm_bn_stats_kernel(a_ref, b_ref, o_ref, s_ref, q_ref, acc_ref):
    """K-tiled matmul; emits conv output (bf16) plus per-channel sum and
    sum-of-squares accumulated across all row tiles (for batch-norm stats)."""
    i = pl.program_id(0)
    k = pl.program_id(1)
    nk = pl.num_programs(1)

    @pl.when(jnp.logical_and(i == 0, k == 0))
    def _():
        s_ref[...] = jnp.zeros_like(s_ref)
        q_ref[...] = jnp.zeros_like(q_ref)

    @pl.when(k == 0)
    def _():
        acc_ref[...] = jnp.zeros_like(acc_ref)

    acc_ref[...] += jnp.dot(a_ref[...], b_ref[...],
                            preferred_element_type=jnp.float32)

    @pl.when(k == nk - 1)
    def _():
        acc = acc_ref[...]
        o_ref[...] = acc.astype(o_ref.dtype)
        s_ref[...] += jnp.sum(acc, axis=0, keepdims=True)
        q_ref[...] += jnp.sum(acc * acc, axis=0, keepdims=True)


def _bn_lrelu_kernel(x_ref, sc_ref, sh_ref, o_ref):
    y = x_ref[...].astype(jnp.float32) * sc_ref[...] + sh_ref[...]
    o_ref[...] = jnp.where(y > 0, y, 0.2 * y).astype(o_ref.dtype)


# ----------------------------- kernel wrappers ------------------------------

_VMEM_LIMIT = 32 * 1024 * 1024  # safe for v5e/v6e/v7x default scoped VMEM


def pallas_conv_matmul(a, b, mode, out_dtype):
    """(Mp, Kp) bf16 @ (Kp, Np) bf16 with fused epilogue.

    mode: "lrelu" | "sigmoid" -> returns activation output only.
          "bn"                -> returns (conv_out, col_sum, col_sumsq).
    """
    Mp, Kp = a.shape
    _, Np = b.shape
    tm = _pick_tile(Mp, 256, 8)
    tk = _pick_tile(Kp, 512, 128)
    grid = (Mp // tm, Kp // tk)

    in_specs = [pl.BlockSpec((tm, tk), lambda i, k: (i, k)),
                pl.BlockSpec((tk, Np), lambda i, k: (k, 0))]
    scratch = [pltpu.VMEM((tm, Np), jnp.float32)]

    if mode == "bn":
        out_shape = (jax.ShapeDtypeStruct((Mp, Np), out_dtype),
                     jax.ShapeDtypeStruct((1, Np), jnp.float32),
                     jax.ShapeDtypeStruct((1, Np), jnp.float32))
        out_specs = (pl.BlockSpec((tm, Np), lambda i, k: (i, 0)),
                     pl.BlockSpec((1, Np), lambda i, k: (0, 0)),
                     pl.BlockSpec((1, Np), lambda i, k: (0, 0)))
        kernel = _mm_bn_stats_kernel
        # stats output is accumulated across the M axis -> sequential M.
        dims = ("arbitrary", "arbitrary")
    else:
        out_shape = jax.ShapeDtypeStruct((Mp, Np), out_dtype)
        out_specs = pl.BlockSpec((tm, Np), lambda i, k: (i, 0))
        kernel = functools.partial(_mm_act_kernel, act=mode)
        dims = ("parallel", "arbitrary")

    return pl.pallas_call(
        kernel,
        out_shape=out_shape,
        grid=grid,
        in_specs=in_specs,
        out_specs=out_specs,
        scratch_shapes=scratch,
        compiler_params=pltpu.CompilerParams(
            dimension_semantics=dims,
            vmem_limit_bytes=_VMEM_LIMIT),
    )(a, b)


def pallas_bn_lrelu(x, scale, shift, out_dtype):
    """Row-tiled y = leaky_relu(x * scale + shift, 0.2) on a lane-padded slab."""
    Mp, Np = x.shape
    tr = _pick_tile(Mp, 512, 8)
    sc = scale.reshape(1, Np).astype(jnp.float32)
    sh = shift.reshape(1, Np).astype(jnp.float32)
    return pl.pallas_call(
        _bn_lrelu_kernel,
        out_shape=jax.ShapeDtypeStruct((Mp, Np), out_dtype),
        grid=(Mp // tr,),
        in_specs=[pl.BlockSpec((tr, Np), lambda i: (i, 0)),
                  pl.BlockSpec((1, Np), lambda i: (0, 0)),
                  pl.BlockSpec((1, Np), lambda i: (0, 0))],
        out_specs=pl.BlockSpec((tr, Np), lambda i: (i, 0)),
        compiler_params=pltpu.CompilerParams(
            dimension_semantics=("parallel",),
            vmem_limit_bytes=_VMEM_LIMIT),
    )(x, sc, sh)


# ------------------------------ layer wrappers ------------------------------

def _im2col(x, k, stride, pad):
    """NHWC -> (B*OH*OW, k*k*C) patches, tap order (kh, kw, c). Forward conv,
    so (unlike the transposed-conv case) no zero-dilated rows are created."""
    B, H, W, C = x.shape
    x_p = jnp.pad(x, ((0, 0), (pad, pad), (pad, pad), (0, 0)))
    OH = (H + 2 * pad - k) // stride + 1
    OW = (W + 2 * pad - k) // stride + 1
    cols = []
    for kh in range(k):
        for kw in range(k):
            cols.append(x_p[:, kh:kh + stride * OH:stride,
                            kw:kw + stride * OW:stride, :])
    a = jnp.concatenate(cols, axis=-1).reshape(B * OH * OW, k * k * C)
    return a, OH, OW


def conv_layer_pallas(x, layer, eps=1e-5):
    """One Discriminator block: Conv2d(bias=False) [+ BatchNorm] + activation.

    x: (B, H, W, Cin) NHWC (bf16 or f32). Returns (B, OH, OW, Cout).
    """
    w_pt = layer["w"]                      # (Cout, Cin, kH, kW), PyTorch layout
    Cout, Cin, k, _ = w_pt.shape
    mode = layer["mode"]

    a, OH, OW = _im2col(x.astype(jnp.bfloat16), k, layer["stride"], layer["pad"])
    B = x.shape[0]
    M, K = a.shape
    Mp, Kp, Np = _round_up(M, 8), _round_up(K, 128), _round_up(Cout, 128)

    a_p = jnp.zeros((Mp, Kp), jnp.bfloat16).at[:M, :K].set(a)
    w = jnp.transpose(w_pt, (2, 3, 1, 0)).reshape(K, Cout)   # (kh, kw, cin, cout)
    b_p = jnp.zeros((Kp, Np), jnp.bfloat16).at[:K, :Cout].set(w.astype(jnp.bfloat16))

    if mode == "bn":
        # Fused matmul + per-channel stats (training-mode batch statistics).
        y_p, s, q = pallas_conv_matmul(a_p, b_p, "bn", jnp.bfloat16)
        n = float(M)                       # padded rows are all-zero -> no bias
        mean = s[0] / n
        var = q[0] / n - mean * mean       # biased variance, as PyTorch BN
        inv = jax.lax.rsqrt(var + eps)
        gamma = jnp.zeros((Np,), jnp.float32).at[:Cout].set(layer["gamma"])
        beta = jnp.zeros((Np,), jnp.float32).at[:Cout].set(layer["beta"])
        scale = gamma * inv
        shift = beta - mean * scale
        y_p = pallas_bn_lrelu(y_p, scale, shift, jnp.bfloat16)
    elif mode == "lrelu":
        y_p = pallas_conv_matmul(a_p, b_p, "lrelu", jnp.bfloat16)
    else:  # "sigmoid" (final layer, Cout=1, M=B -> tiny; padding waste negligible)
        y_p = pallas_conv_matmul(a_p, b_p, "sigmoid", jnp.float32)

    return y_p[:M, :Cout].reshape(B, OH, OW, Cout)


def discriminator_forward(x_nchw, layers):
    """Forward pass of Discriminator. x_nchw: (B, nc, H, W). Returns (B,)."""
    # TODO(synk): the ngpu>1 nn.parallel.data_parallel branch is a CUDA-only
    # dispatch detail with identical math; it is intentionally not reproduced.
    x = jnp.transpose(x_nchw, (0, 2, 3, 1))      # NCHW -> NHWC
    for layer in layers:
        x = conv_layer_pallas(x, layer)
    # output.view(-1, 1).squeeze(1); final map is (B, 1, 1, 1).
    return x.reshape(-1).astype(jnp.float32)


# ----------------------------- parameter setup ------------------------------

def build_discriminator_params(key, nc, ndf, img_sz):
    """Deterministic synthetic params matching Discriminator._init_main shapes."""
    num_extra = int(math.log2(img_sz)) - 2
    specs = [(nc, ndf, 2, 1, "lrelu")]
    for cl in range(num_extra):
        if cl == num_extra - 1:
            specs.append((ndf * 2 ** cl, 1, 1, 0, "sigmoid"))
        else:
            specs.append((ndf * 2 ** cl, ndf * 2 ** (cl + 1), 2, 1, "bn"))
    layers = []
    for (cin, cout, stride, pad, mode) in specs:
        key, k1, k2, k3 = jax.random.split(key, 4)
        layer = {
            "w": 0.02 * jax.random.normal(k1, (cout, cin, 4, 4), jnp.float32),
            "stride": stride,
            "pad": pad,
            "mode": mode,
        }
        if mode == "bn":
            layer["gamma"] = 1.0 + 0.1 * jax.random.normal(k2, (cout,), jnp.float32)
            layer["beta"] = 0.05 * jax.random.normal(k3, (cout,), jnp.float32)
        layers.append(layer)
    return layers


# ------------------------------ pure-JAX reference --------------------------

def reference_forward(x_nchw, layers, eps=1e-5):
    x = jnp.transpose(x_nchw, (0, 2, 3, 1))
    for layer in layers:
        w = jnp.transpose(layer["w"], (2, 3, 1, 0))   # (kH, kW, Cin, Cout) HWIO
        x = jax.lax.conv_general_dilated(
            x, w, window_strides=(layer["stride"],) * 2,
            padding=[(layer["pad"],) * 2] * 2,
            dimension_numbers=("NHWC", "HWIO", "NHWC"),
            precision=jax.lax.Precision.HIGHEST)
        mode = layer["mode"]
        if mode == "bn":
            mean = jnp.mean(x, axis=(0, 1, 2))
            var = jnp.var(x, axis=(0, 1, 2))
            xn = (x - mean) * jax.lax.rsqrt(var + eps)
            x = xn * layer["gamma"] + layer["beta"]
            x = jnp.where(x > 0, x, 0.2 * x)
        elif mode == "lrelu":
            x = jnp.where(x > 0, x, 0.2 * x)
        else:
            x = jax.nn.sigmoid(x)
    return jnp.transpose(x, (0, 3, 1, 2)).reshape(-1)


# ------------------------------------ main -----------------------------------

if __name__ == "__main__":
    B, nc, ndf, img_sz = 2, 3, 16, 16

    key = jax.random.PRNGKey(0)
    kx, kp = jax.random.split(key)
    layers = build_discriminator_params(kp, nc, ndf, img_sz)
    x = jax.random.normal(kx, (B, nc, img_sz, img_sz), jnp.float32)

    out = jax.block_until_ready(discriminator_forward(x, layers))
    assert out.shape == (B,), out.shape

    ref = jax.block_until_ready(reference_forward(x, layers))
    max_err = float(jnp.max(jnp.abs(out - ref)))
    assert max_err < 2e-2, f"mismatch vs reference: {max_err}"

    print("KERNEL_OK")
</pallas_src>

<mosaic_0001>
module attributes {stable_mosaic.version = 11 : i64} {
  func.func @_mm_act_kernel(%arg0: i32, %arg1: i32, %arg2: memref<128x128xbf16, #tpu.memory_space<vmem>>, %arg3: memref<128x128xbf16, #tpu.memory_space<vmem>>, %arg4: memref<128x128xbf16, #tpu.memory_space<vmem>>, %arg5: memref<128x128xf32, #tpu.memory_space<vmem>>) attributes {dimension_semantics = [#tpu.dimension_semantics<parallel>, #tpu.dimension_semantics<arbitrary>], iteration_bounds = array<i64: 1, 1>, scalar_prefetch = 0 : i64, scratch_operands = 1 : i64, tpu.core_type = #tpu.core_type<tc>, window_params = [{transform_indices = @transform_0, window_bounds = array<i64: 128, 128>}, {transform_indices = @transform_1, window_bounds = array<i64: 128, 128>}, {transform_indices = @transform_2, window_bounds = array<i64: 128, 128>}]} {
    %c0_i32 = arith.constant 0 : i32
    %0 = arith.cmpi eq, %arg1, %c0_i32 : i32
    %1 = arith.extui %0 : i1 to i32
    %c0_i32_0 = arith.constant 0 : i32
    %2 = arith.cmpi ne, %1, %c0_i32_0 : i32
    scf.if %2 {
      %cst_10 = arith.constant 0.000000e+00 : f32
      %12 = vector.broadcast %cst_10 : f32 to vector<128x128xf32>
      %c0_11 = arith.constant 0 : index
      %c0_12 = arith.constant 0 : index
      %13 = vector.load %arg5[%c0_11, %c0_12] : memref<128x128xf32, #tpu.memory_space<vmem>>, vector<128x128xf32>
      tpu.vector_store %arg5[%c0_11, %c0_12], %12 {strides = array<i32>} : memref<128x128xf32, #tpu.memory_space<vmem>>, vector<128x128xf32>,
    } else {
    }
    %c0 = arith.constant 0 : index
    %c0_1 = arith.constant 0 : index
    %3 = vector.load %arg5[%c0, %c0_1] : memref<128x128xf32, #tpu.memory_space<vmem>>, vector<128x128xf32>
    %c0_2 = arith.constant 0 : index
    %c0_3 = arith.constant 0 : index
    %4 = vector.load %arg2[%c0_2, %c0_3] : memref<128x128xbf16, #tpu.memory_space<vmem>>, vector<128x128xbf16>
    %c0_4 = arith.constant 0 : index
    %c0_5 = arith.constant 0 : index
    %5 = vector.load %arg3[%c0_4, %c0_5] : memref<128x128xbf16, #tpu.memory_space<vmem>>, vector<128x128xbf16>
    %cst = arith.constant dense<0.000000e+00> : vector<128x128xf32>
    %6 = tpu.matmul %4, %5, %cst {dimension_numbers = #tpu.dot_dimension_numbers<[1], [0], [0], [1], [0, 0, 1, 1], [], []>} : vector<128x128xbf16>, vector<128x128xbf16>, vector<128x128xf32> -> vector<128x128xf32>
    %7 = arith.addf %3, %6 : vector<128x128xf32>
    %c0_6 = arith.constant 0 : index
    %c0_7 = arith.constant 0 : index
    %8 = vector.load %arg5[%c0_6, %c0_7] : memref<128x128xf32, #tpu.memory_space<vmem>>, vector<128x128xf32>
    tpu.vector_store %arg5[%c0_6, %c0_7], %7 {strides = array<i32>} : memref<128x128xf32, #tpu.memory_space<vmem>>, vector<128x128xf32>,
    %c0_i32_8 = arith.constant 0 : i32
    %9 = arith.cmpi eq, %arg1, %c0_i32_8 : i32
    %10 = arith.extui %9 : i1 to i32
    %c0_i32_9 = arith.constant 0 : i32
    %11 = arith.cmpi ne, %10, %c0_i32_9 : i32
    scf.if %11 {
      %c0_10 = arith.constant 0 : index
      %c0_11 = arith.constant 0 : index
      %12 = vector.load %arg5[%c0_10, %c0_11] : memref<128x128xf32, #tpu.memory_space<vmem>>, vector<128x128xf32>
      %cst_12 = arith.constant 0.000000e+00 : f32
      %13 = vector.broadcast %cst_12 : f32 to vector<128x128xf32>
      %14 = arith.cmpf ogt, %12, %13 : vector<128x128xf32>
      %cst_13 = arith.constant 2.000000e-01 : f32
      %15 = vector.broadcast %cst_13 : f32 to vector<128x128xf32>
      %16 = arith.mulf %15, %12 : vector<128x128xf32>
      %17 = arith.select %14, %12, %16 : vector<128x128xi1>, vector<128x128xf32>
      %18 = arith.truncf %17 : vector<128x128xf32> to vector<128x128xbf16>
      %c0_14 = arith.constant 0 : index
      %c0_15 = arith.constant 0 : index
      %19 = vector.load %arg4[%c0_14, %c0_15] : memref<128x128xbf16, #tpu.memory_space<vmem>>, vector<128x128xbf16>
      tpu.vector_store %arg4[%c0_14, %c0_15], %18 {strides = array<i32>} : memref<128x128xbf16, #tpu.memory_space<vmem>>, vector<128x128xbf16>,
    } else {
    }
    return
  }
  func.func @transform_0(%arg0: i32, %arg1: i32) -> (i32, i32) {
    %c0_i32 = arith.constant 0 : i32
    return %arg0, %arg1 : i32, i32
  }
  func.func @transform_1(%arg0: i32, %arg1: i32) -> (i32, i32) {
    %c0_i32 = arith.constant 0 : i32
    %c0_i32_0 = arith.constant 0 : i32
    return %arg1, %c0_i32 : i32, i32
  }
  func.func @transform_2(%arg0: i32, %arg1: i32) -> (i32, i32) {
    %c0_i32 = arith.constant 0 : i32
    %c0_i32_0 = arith.constant 0 : i32
    return %arg0, %c0_i32 : i32, i32
  }
}

</mosaic_0001>

<bundles_post_ra>
// kernel: tpu_custom_call.1
= control target key start
LH: loop header
LB: loop body
LE: loop exit
PB: predicated region body
PF: predicated region fallthrough
CT: control target
= control target key end

     0   :  { %7 = vsyncpa [#allocation4], 0  ;;  %s787_s0 = inlined_call_operand.hbm [shape: bf16[128,128], index: 0, kind: input, shape index: {}]   ;;  %s788_s1 = inlined_call_operand.hbm [shape: bf16[128,128], index: 1, kind: input, shape index: {}]   ;;  %s789_s2 = inlined_call_operand.hbm [shape: bf16[128,128], index: 2, kind: output, shape index: {}]  }
   0x1   :  { %8 = vsyncpa [#allocation7], 0 }
   0x2   :  { %9 = vsyncpa [#allocation5], 0  ;;  %s745_s9 = smov [#allocation3]  }
   0x3   :  { %s15_s10 = sshll.u32 %s745_s9, 4  ;;  %s16_s10 = int_to_ptr.vmem [resolvable:$true] %s15_s10 }
   0x4   :  { %s687_s11 = scalar_lea.vmem %s16_s10, 1024  ;;  %p692_p1 = scmp.lt.s32.totalorder %s16_s10, %s16_s10 }
   0x5   :  { %p688_p0 = scmp.ne.s32.totalorder %s16_s10, %s687_s11  ;;  %p693_p2 = scmp.lt.s32.totalorder %s687_s11, %s687_s11 }
   0x7   :  { %p694_p3 = por %p693_p2, %p692_p1 }
   0x9   :  { %p695_p4 = pnand %p694_p3, %p688_p0 }
   0xb   :  { %698 = shalt.err (!%p695_p4)
}
   0xc   :  { %s746_s12 = smov 64   ;;  %s747_s13 = smov 4  }
   0xd   :  { %21 = dma.hbm_to_vmem [thread:$0]  %s787_s0, 1024, %s16_s10, [#allocation4], %s746_s12, %s746_s12, %s747_s13  }
   0xe   :  { %s748_s16 = smov [#allocation6]  }
   0xf   :  { %s27_s17 = sshll.u32 %s748_s16, 4  ;;  %s28_s17 = int_to_ptr.vmem [resolvable:$true] %s27_s17 }
  0x10   :  { %s707_s18 = scalar_lea.vmem %s28_s17, 1024  ;;  %p712_p6 = scmp.lt.s32.totalorder %s28_s17, %s28_s17 }
  0x11   :  { %p708_p5 = scmp.ne.s32.totalorder %s28_s17, %s707_s18  ;;  %p713_p7 = scmp.lt.s32.totalorder %s707_s18, %s707_s18 }
  0x13   :  { %p714_p8 = por %p713_p7, %p712_p6 }
  0x15   :  { %p715_p9 = pnand %p714_p8, %p708_p5 }
  0x17   :  { %718 = shalt.err (!%p715_p9)
}
  0x18   :  { %33 = dma.hbm_to_vmem [thread:$0]  %s788_s1, 1024, %s28_s17, [#allocation7], %s746_s12, %s746_s12, %s747_s13  }
  0x19   :  { %739 = dma.done.wait [#allocation4], 1024  }
  0x1a   :  { %740 = vsyncadd [#allocation4], 4294966272 }
  0x1b   :  { %741 = dma.done.wait [#allocation7], 1024  }
  0x1c   :  { %742 = vsyncadd [#allocation7], 4294966272  ;;  %v663_v0 = vld [vmem:[#allocation6 + $0x38] sm:$0xff]   ;;  %v664_v1 = vld [vmem:[#allocation6 + $0x30] sm:$0xff]   ;;  %s749_s0 = smov [#allocation8]  }
  0x1d   :  { %610 = vmatprep.subr.bf16.mxu0 %v663_v0  ;;  %642 = vmatprep.subr.bf16.mxu1 %v663_v0  ;;  %v665_v2 = vld [vmem:[#allocation6 + $0x28] sm:$0xff]   ;;  %v666_v3 = vld [vmem:[#allocation6 + $0x20] sm:$0xff]   ;;  %v667_v6 = vld [vmem:[#allocation6 + $0x18] sm:$0xff]   ;;  %s486_s1 = sshll.u32 %s749_s0, 4  ;;  %s487_s1 = int_to_ptr.vmem [resolvable:$true] %s486_s1 }
  0x1e   :  { %611 = vmatpush3.bf16.msra.mxu0 %v663_v0  ;;  %650 = vmatpush3.bf16.msra.mxu1 %v663_v0  ;;  %v671_v4 = vld [vmem:[#allocation3] sm:$0xff]   ;;  %v668_v7 = vld [vmem:[#allocation6 + $0x10] sm:$0xff]   ;;  %v669_v8 = vld [vmem:[#allocation6 + $0x8] sm:$0xff]   ;;  %s719_s21 = scalar_lea.vmem %s487_s1, 1024  ;;  %p724_p11 = scmp.lt.s32.totalorder %s487_s1, %s487_s1 }
  0x1f   :  { %612 = vmatprep.subr.bf16.mxu0 %v664_v1  ;;  %643 = vmatprep.subr.bf16.mxu1 %v664_v1  ;;  %v672_v5 = vld [vmem:[#allocation3 + $0x20] sm:$0xff]   ;;  %v673_v10 = vld [vmem:[#allocation3 + $0x8] sm:$0xff]   ;;  %v675_v12 = vld [vmem:[#allocation3 + $0x10] sm:$0xff]   ;;  %p720_p10 = scmp.ne.s32.totalorder %s487_s1, %s719_s21  ;;  %p725_p12 = scmp.lt.s32.totalorder %s719_s21, %s719_s21 }
  0x20   :  { %626 = vmatprep.mubr.bf16.mxu0 %v671_v4  ;;  %634 = vmatprep.mubr.bf16.mxu1 %v672_v5  ;;  %v670_v9 = vld [vmem:[#allocation6] sm:$0xff]   ;;  %v674_v11 = vld [vmem:[#allocation3 + $0x28] sm:$0xff]   ;;  %v676_v13 = vld [vmem:[#allocation3 + $0x30] sm:$0xff]  }
  0x21   :  { %v677_v14 = vld [vmem:[#allocation3 + $0x18] sm:$0xff]   ;;  %p726_p13 = por %p725_p12, %p724_p11 }
  0x22   :  { %613 = vmatpush3.bf16.msra.mxu0 %v664_v1  ;;  %651 = vmatpush3.bf16.msra.mxu1 %v664_v1  ;;  %v678_v15 = vld [vmem:[#allocation3 + $0x38] sm:$0xff]  }
  0x23   :  { %614 = vmatprep.subr.bf16.mxu0 %v665_v2  ;;  %644 = vmatprep.subr.bf16.mxu1 %v665_v2  ;;  %p727_p0 = pnand %p726_p13, %p720_p10 }
  0x26   :  { %615 = vmatpush3.bf16.msra.mxu0 %v665_v2  ;;  %652 = vmatpush3.bf16.msra.mxu1 %v665_v2 }
  0x27   :  { %616 = vmatprep.subr.bf16.mxu0 %v666_v3  ;;  %645 = vmatprep.subr.bf16.mxu1 %v666_v3 }
  0x2a   :  { %617 = vmatpush3.bf16.msra.mxu0 %v666_v3  ;;  %653 = vmatpush3.bf16.msra.mxu1 %v666_v3 }
  0x2b   :  { %618 = vmatprep.subr.bf16.mxu0 %v667_v6  ;;  %646 = vmatprep.subr.bf16.mxu1 %v667_v6 }
  0x2e   :  { %619 = vmatpush3.bf16.msra.mxu0 %v667_v6  ;;  %654 = vmatpush3.bf16.msra.mxu1 %v667_v6 }
  0x2f   :  { %620 = vmatprep.subr.bf16.mxu0 %v668_v7  ;;  %647 = vmatprep.subr.bf16.mxu1 %v668_v7 }
  0x32   :  { %621 = vmatpush3.bf16.msra.mxu0 %v668_v7  ;;  %655 = vmatpush3.bf16.msra.mxu1 %v668_v7 }
  0x33   :  { %622 = vmatprep.subr.bf16.mxu0 %v669_v8  ;;  %648 = vmatprep.subr.bf16.mxu1 %v669_v8 }
  0x36   :  { %623 = vmatpush3.bf16.msra.mxu0 %v669_v8  ;;  %656 = vmatpush3.bf16.msra.mxu1 %v669_v8 }
  0x37   :  { %624 = vmatprep.subr.bf16.mxu0 %v670_v9  ;;  %649 = vmatprep.subr.bf16.mxu1 %v670_v9 }
  0x3a   :  { %625 = vmatpush3.bf16.msra.mxu0 %v670_v9  ;;  %657 = vmatpush3.bf16.msra.mxu1 %v670_v9 }
  0x3d   :  { %627 = vmatmul.mubr.bf16.vlgmr.msra.gmra.mxu0 %v673_v10  ;;  %635 = vmatmul.mubr.bf16.vlgmr.msra.gmra.mxu1 %v674_v11 }
  0x3e   :  { %630 = vmatprep.mubr.bf16.mxu0 %v675_v12  ;;  %638 = vmatprep.mubr.bf16.mxu1 %v676_v13 }
  0x45   :  { %631 = vmatmul.mubr.bf16.gmra.mxu0 %v677_v14  ;;  %639 = vmatmul.mubr.bf16.gmra.mxu1 %v678_v15 }
  0xfd   :  { %v628_v16 = vpop.f32.mrf.mxu0  ;;  %v636_v17 = vpop.f32.mrf.mxu1 }
  0xfe   :  { %vm355_vm0 = vcmp.gt.f32.partialorder %v628_v16, 0.0  ;;  %v371_v18 = vmul.f32 0.2, %v628_v16  ;;  %v379_v19 = vmul.f32 0.2, %v636_v17  ;;  %vm363_vm1 = vcmp.gt.f32.partialorder %v636_v17, 0.0 }
  0xff   :  { %v239_v20 = vpop.f32.mrf.mxu0  ;;  %v271_v21 = vpop.f32.mrf.mxu1 }
 0x100   :  { %v387_v22 = vsel %vm355_vm0, %v628_v16, %v371_v18  ;;  %v369_v23 = vmul.f32 0.2, %v239_v20  ;;  %vm353_vm2 = vcmp.gt.f32.partialorder %v239_v20, 0.0  ;;  %v395_v27 = vsel %vm363_vm1, %v636_v17, %v379_v19 }
 0x101   :  { %v629_v24 = vpop.f32.mrf.mxu0  ;;  %v637_v25 = vpop.f32.mrf.mxu1  ;;  %vm361_vm5 = vcmp.gt.f32.partialorder %v271_v21, 0.0  ;;  %v377_v28 = vmul.f32 0.2, %v271_v21 }
 0x102   :  { %vm356_vm3 = vcmp.gt.f32.partialorder %v629_v24, 0.0  ;;  %v372_v26 = vmul.f32 0.2, %v629_v24  ;;  %vm364_vm4 = vcmp.gt.f32.partialorder %v637_v25, 0.0  ;;  %v380_v29 = vmul.f32 0.2, %v637_v25 }
 0x103   :  { %v242_v30 = vpop.f32.mrf.mxu0  ;;  %v274_v31 = vpop.f32.mrf.mxu1  ;;  %v385_v34 = vsel %vm353_vm2, %v239_v20, %v369_v23  ;;  %v393_v43 = vsel %vm361_vm5, %v271_v21, %v377_v28 }
 0x104   :  { %v388_v32 = vsel %vm356_vm3, %v629_v24, %v372_v26  ;;  %vm354_vm6 = vcmp.gt.f32.partialorder %v242_v30, 0.0  ;;  %v370_v33 = vmul.f32 0.2, %v242_v30  ;;  %vm362_vm7 = vcmp.gt.f32.partialorder %v274_v31, 0.0 }
 0x105   :  { %v555_v35 = vpack.c.bf16 %v388_v32, %v387_v22  ;;  %v396_v36 = vsel %vm364_vm4, %v637_v25, %v380_v29  ;;  %v378_v37 = vmul.f32 0.2, %v274_v31  ;;  %v632_v38 = vpop.f32.mrf.mxu0  ;;  %v640_v39 = vpop.f32.mrf.mxu1 }
 0x106   :  { %v575_v40 = vpack.c.bf16 %v396_v36, %v395_v27  ;;  %v386_v41 = vsel %vm354_vm6, %v242_v30, %v370_v33  ;;  %vm359_vm8 = vcmp.gt.f32.partialorder %v632_v38, 0.0  ;;  %v375_v42 = vmul.f32 0.2, %v632_v38 }
 0x107   :  { %587 = vst [vmem:[#allocation8 + $0x8] sm:$0xff] %v555_v35   ;;  %v550_v44 = vpack.c.bf16 %v386_v41, %v385_v34  ;;  %v394_v45 = vsel %vm362_vm7, %v274_v31, %v378_v37  ;;  %v255_v46 = vpop.f32.mrf.mxu0  ;;  %v287_v47 = vpop.f32.mrf.mxu1  ;;  %vm367_vm9 = vcmp.gt.f32.partialorder %v640_v39, 0.0  ;;  %v383_v50 = vmul.f32 0.2, %v640_v39 }
 0x108   :  { %591 = vst [vmem:[#allocation8 + $0x28] sm:$0xff] %v575_v40   ;;  %v570_v48 = vpack.c.bf16 %v394_v45, %v393_v43  ;;  %v391_v49 = vsel %vm359_vm8, %v632_v38, %v375_v42  ;;  %v373_v53 = vmul.f32 0.2, %v255_v46  ;;  %vm357_vm12 = vcmp.gt.f32.partialorder %v255_v46, 0.0 }
 0x109   :  { %551 = vst [vmem:[#allocation8] sm:$0xff] %v550_v44   ;;  %v633_v51 = vpop.f32.mrf.mxu0  ;;  %v641_v52 = vpop.f32.mrf.mxu1  ;;  %vm365_vm13 = vcmp.gt.f32.partialorder %v287_v47, 0.0  ;;  %v381_v55 = vmul.f32 0.2, %v287_v47  ;;  %v399_v61 = vsel %vm367_vm9, %v640_v39, %v383_v50 }
 0x10a   :  { %590 = vst [vmem:[#allocation8 + $0x20] sm:$0xff] %v570_v48   ;;  %vm360_vm10 = vcmp.gt.f32.partialorder %v633_v51, 0.0  ;;  %v376_v54 = vmul.f32 0.2, %v633_v51  ;;  %vm368_vm11 = vcmp.gt.f32.partialorder %v641_v52, 0.0  ;;  %v389_v1 = vsel %vm357_vm12, %v255_v46, %v373_v53 }
 0x10b   :  { %v384_v56 = vmul.f32 0.2, %v641_v52  ;;  %v258_v57 = vpop.f32.mrf.mxu0  ;;  %v290_v58 = vpop.f32.mrf.mxu1  ;;  %v397_v4 = vsel %vm365_vm13, %v287_v47, %v381_v55 }
 0x10c   :  { %v392_v59 = vsel %vm360_vm10, %v633_v51, %v376_v54  ;;  %vm358_vm14 = vcmp.gt.f32.partialorder %v258_v57, 0.0  ;;  %v374_v60 = vmul.f32 0.2, %v258_v57  ;;  %vm366_vm15 = vcmp.gt.f32.partialorder %v290_v58, 0.0 }
 0x10d   :  { %v565_v62 = vpack.c.bf16 %v392_v59, %v391_v49  ;;  %v400_v63 = vsel %vm368_vm11, %v641_v52, %v384_v56  ;;  %v382_v0 = vmul.f32 0.2, %v290_v58 }
 0x10e   :  { %v585_v2 = vpack.c.bf16 %v400_v63, %v399_v61  ;;  %v390_v3 = vsel %vm358_vm14, %v258_v57, %v374_v60 }
 0x10f   :  { %589 = vst [vmem:[#allocation8 + $0x18] sm:$0xff] %v565_v62   ;;  %v560_v5 = vpack.c.bf16 %v390_v3, %v389_v1  ;;  %v398_v6 = vsel %vm366_vm15, %v290_v58, %v382_v0 }
 0x110   :  { %593 = vst [vmem:[#allocation8 + $0x38] sm:$0xff] %v585_v2   ;;  %v580_v7 = vpack.c.bf16 %v398_v6, %v397_v4 }
 0x111   :  { %588 = vst [vmem:[#allocation8 + $0x10] sm:$0xff] %v560_v5  }
 0x112   :  { %592 = vst [vmem:[#allocation8 + $0x30] sm:$0xff] %v580_v7  }
 0x113   :  { %730 = shalt.err (!%p727_p0)
}
 0x114   :  { %492 = dma.vmem_to_hbm [thread:$0]  %s487_s1, 1024, %s789_s2, [#allocation5], %s746_s12, %s746_s12, %s747_s13  }
 0x115   :  { %743 = dma.done.wait [#allocation5], 1024  }
 0x116   :  { %744 = vsyncadd [#allocation5], 4294966272 }
 0x117   :  { %496 = vsyncpa [#allocation4], 1 }
 0x118   :  { %497 = vsyncpa [#allocation7], 1 }
 0x119   :  { %498 = vsyncpa [#allocation5], 1 }

</bundles_post_ra>
